<compile_context>
chip_gen: v7x
topology: tpu7x:2x2x1
jax: 0.10.0
libtpu: 0.0.40
codegen_flags: <defaults>
</compile_context>

<pallas_src>
import functools

import jax
import jax.numpy as jnp
from jax import lax
from jax.experimental import pallas as pl
from jax.experimental.pallas import tpu as pltpu


# ----------------------------------------------------------------------------
# Helpers
# ----------------------------------------------------------------------------
def _round_up(x, m):
    return ((x + m - 1) // m) * m


def _default_target_rows():
    """1024-row tiles when plenty of VMEM (v5e/v6e), else 512 (v7x)."""
    try:
        vmem = pltpu.get_tpu_info().vmem_capacity_bytes
        return 1024 if vmem >= (96 << 20) else 512
    except Exception:
        return 512


def _const_spec(shape, single_buffer):
    """BlockSpec for a grid-invariant operand (constant index map)."""
    index_map = lambda i: (0,) * len(shape)
    if single_buffer:
        # Never re-DMA'd -> no need for double buffering (saves VMEM).
        return pl.BlockSpec(shape, index_map, pipeline_mode=pl.Buffered(1))
    return pl.BlockSpec(shape, index_map)


def _pick_row_tile(rows, row_align, target_rows, min_grid=4):
    """Row tile <= target_rows, aligned, with >= min_grid grid steps (rows get padded)."""
    ngrid = max(min_grid, -(-rows // target_rows))
    tm = _round_up(-(-rows // ngrid), row_align)
    tm = max(row_align, min(tm, _round_up(target_rows, row_align)))
    while tm > row_align and -(-rows // tm) < min_grid:
        tm -= row_align
    return tm


def _pick_h_tile(B, H, W, row_align, target_rows, min_grid=4):
    """Largest th | H with th*W aligned, <= target_rows and grid B*H/th >= min_grid."""
    min_grid = min(min_grid, B * H)
    for th in range(H, 0, -1):
        if H % th:
            continue
        tm = th * W
        if tm % row_align:
            continue
        if tm <= target_rows and (B * H) // th >= min_grid:
            return th
    return None


# ----------------------------------------------------------------------------
# Kernels
# ----------------------------------------------------------------------------
def _expand_ln_kernel(x_ref, wc_ref, gsum_ref, gamma_ref, beta_ref, o_ref, *, eps):
    """Lane-dense output path.

    x_ref     : (TM, C)    input tokens
    wc_ref    : (C, 2C)    centered expand weight W - W@G, bf16
    gsum_ref  : (2C, 2C)   block-diagonal group-averaging matrix G, bf16
    gamma_ref : (1, 2C)    LayerNorm weight tiled over the 4 groups, f32
    beta_ref  : (1, 2C)    LayerNorm bias tiled over the 4 groups, f32
    o_ref     : (TM, 2C)   grouped-normalized expanded tokens
    """
    # Centered expand: bf16 operands, f32 accumulation on the MXU.
    yc = jnp.dot(x_ref[...].astype(jnp.bfloat16), wc_ref[...],
                 preferred_element_type=jnp.float32)
    # Group variance via one bf16 MXU pass (stays 128-lane dense).
    var = jnp.dot((yc * yc).astype(jnp.bfloat16), gsum_ref[...],
                  preferred_element_type=jnp.float32)
    yn = yc * lax.rsqrt(var + eps)
    o_ref[...] = (yn * gamma_ref[...] + beta_ref[...]).astype(o_ref.dtype)


def _expand_ln_shuffle_kernel(x_ref, wc_ref, gsum_ref, gamma_ref, beta_ref, o_ref,
                              *, eps, th, w, c_half):
    """Fused pixel-shuffle output path.

    o_ref : (1, th, 2, W, 2*c_out) -- (b, h, p1, w, (p2 c)) memory order, so the
            wrapper's final (B, 4*H*W, c_out) view is a free reshape.
    """
    yc = jnp.dot(x_ref[...].astype(jnp.bfloat16), wc_ref[...],
                 preferred_element_type=jnp.float32)
    var = jnp.dot((yc * yc).astype(jnp.bfloat16), gsum_ref[...],
                  preferred_element_type=jnp.float32)
    out = (yc * lax.rsqrt(var + eps) * gamma_ref[...]
           + beta_ref[...]).astype(o_ref.dtype)                      # (th*W, 4*c_out)
    # Channel halves [0:2c) / [2c:4c) are the p1=0 / p1=1 groups; each store is
    # a contiguous (th, W, 2*c_out) window with >=128 live lanes.
    o_ref[0, :, 0, :, :] = out[:, :c_half].reshape(th, w, c_half)
    o_ref[0, :, 1, :, :] = out[:, c_half:].reshape(th, w, c_half)


# ----------------------------------------------------------------------------
# Wrapper
# ----------------------------------------------------------------------------
def patch_expand_pallas(x, w_expand, gamma, beta, *, input_resolution, eps=1e-5,
                        target_rows=None, out_dtype=None, min_grid=4):
    """PatchExpand.forward for dim_scale == 2.

    x        : (B, H*W, C)
    w_expand : (C, 2C)   (== torch expand.weight.T)
    gamma    : (C//2,)   LayerNorm weight
    beta     : (C//2,)   LayerNorm bias
    returns  : (B, 4*H*W, C//2)
    """
    B, L, C = x.shape
    H, W = input_resolution
    assert L == H * W, "input feature has wrong size"
    C2 = w_expand.shape[1]
    assert w_expand.shape == (C, C2) and C2 == 2 * C
    c_out = C2 // 4  # == C // 2
    assert gamma.shape == (c_out,) and beta.shape == (c_out,)
    # TODO(synk): dim_scale != 2 (nn.Identity expand) variant not implemented.

    out_dtype = x.dtype if out_dtype is None else jnp.dtype(out_dtype)
    if target_rows is None:
        target_rows = _default_target_rows()

    rows = B * L
    x2 = x.reshape(rows, C)

    # ---- parameters prepared ONCE in the wrapper ---------------------------
    grp = jnp.arange(C2) // c_out
    gsum_f32 = (grp[:, None] == grp[None, :]).astype(jnp.float32) / float(c_out)
    w_f32 = w_expand.astype(jnp.float32)
    w_c = (w_f32 - w_f32 @ gsum_f32).astype(jnp.bfloat16)     # centered expand weight
    gsum = gsum_f32.astype(jnp.bfloat16)
    gamma_t = jnp.tile(gamma.reshape(1, c_out), (1, 4)).astype(jnp.float32)
    beta_t = jnp.tile(beta.reshape(1, c_out), (1, 4)).astype(jnp.float32)

    row_align = 16 if (x.dtype == jnp.bfloat16 or out_dtype == jnp.bfloat16) else 8

    # ---- choose output layout / tiling -------------------------------------
    fuse_shuffle = (c_out % 64 == 0)   # lane-aligned groups -> fuse the shuffle
    th = _pick_h_tile(B, H, W, row_align, target_rows, min_grid) if fuse_shuffle else None

    if th is not None:
        tm = th * W
        nh = H // th
        grid = (B * nh,)
        rows_pad = rows
        x_in = x2
        out_shape = jax.ShapeDtypeStruct((B, H, 2, W, C), out_dtype)
        out_spec = pl.BlockSpec((1, th, 2, W, C),
                                lambda i: (i // nh, i % nh, 0, 0, 0))
        kernel = functools.partial(_expand_ln_shuffle_kernel,
                                   eps=eps, th=th, w=W, c_half=C)
    else:
        tm = _pick_row_tile(rows, row_align, target_rows, min_grid)
        rows_pad = _round_up(rows, tm)
        x_in = x2 if rows_pad == rows else jnp.pad(x2, ((0, rows_pad - rows), (0, 0)))
        grid = (rows_pad // tm,)
        out_shape = jax.ShapeDtypeStruct((rows_pad, C2), out_dtype)
        out_spec = pl.BlockSpec((tm, C2), lambda i: (i, 0))
        kernel = functools.partial(_expand_ln_kernel, eps=eps)

    # ---- cost estimate + explicit VMEM budget -------------------------------
    x_bytes = x.dtype.itemsize
    o_bytes = out_dtype.itemsize
    rows_eff = tm * grid[0]
    inv_bytes = C * C2 * 2 + C2 * C2 * 2 + 2 * C2 * 4
    cost = pl.CostEstimate(
        flops=int(2 * rows_eff * C * C2 + 2 * rows_eff * C2 * C2),
        transcendentals=int(rows_eff * C2),
        bytes_accessed=int(rows_eff * C * x_bytes + rows_eff * C2 * o_bytes + inv_bytes),
    )
    vmem_est = (2 * tm * C * x_bytes          # double-buffered x tile
                + 2 * tm * C2 * o_bytes       # double-buffered out tile
                + 2 * inv_bytes               # resident operands (worst case 2 bufs)
                + 4 * tm * C2 * 4             # f32 intermediates headroom
                + (4 << 20))
    vmem_limit = int(min(110 << 20, max(vmem_est, 32 << 20)))

    def _run(single_buffer_invariants):
        in_specs = [
            pl.BlockSpec((tm, C), lambda i: (i, 0)),
            _const_spec((C, C2), single_buffer_invariants),
            _const_spec((C2, C2), single_buffer_invariants),
            _const_spec((1, C2), single_buffer_invariants),
            _const_spec((1, C2), single_buffer_invariants),
        ]
        return pl.pallas_call(
            kernel,
            out_shape=out_shape,
            grid_spec=pltpu.PrefetchScalarGridSpec(
                num_scalar_prefetch=0,
                grid=grid,
                in_specs=in_specs,
                out_specs=out_spec,
            ),
            compiler_params=pltpu.CompilerParams(
                dimension_semantics=("parallel",),
                vmem_limit_bytes=vmem_limit),
            cost_estimate=cost,
        )(x_in, w_c, gsum, gamma_t, beta_t)

    try:
        y = _run(True)     # single-buffer grid-invariant operands (saves VMEM)
    except Exception:
        y = _run(False)    # fallback if pipeline_mode=pl.Buffered(1) is unsupported

    if th is not None:
        # (B, H, 2, W, 2, c_out) row-major == (B, 2H, 2W, c_out): free reshape.
        return y.reshape(B, 4 * L, c_out)

    # Small-c_out path: shuffle in the wrapper (pure layout plumbing).
    y = y[:rows] if rows_pad != rows else y
    y = y.reshape(B, H, W, 2, 2, c_out).transpose(0, 1, 3, 2, 4, 5)
    return y.reshape(B, 4 * L, c_out)


# ----------------------------------------------------------------------------
# Pure-JAX reference (mirrors the PyTorch module, f32 end to end)
# ----------------------------------------------------------------------------
def _ref_patch_expand(x, w_expand, gamma, beta, input_resolution, eps=1e-5):
    B, L, C = x.shape
    H, W = input_resolution
    C2 = w_expand.shape[1]
    c_out = C2 // 4
    y = jnp.einsum("blc,cd->bld", x.astype(jnp.float32), w_expand.astype(jnp.float32))
    y = y.reshape(B, H, W, 2, 2, c_out).transpose(0, 1, 3, 2, 4, 5).reshape(B, 4 * L, c_out)
    mean = jnp.mean(y, axis=-1, keepdims=True)
    var = jnp.mean((y - mean) ** 2, axis=-1, keepdims=True)
    return (y - mean) * lax.rsqrt(var + eps) * gamma + beta


if __name__ == "__main__":
    def _run_case(key, B, H, W, dim):
        L = H * W
        kx, kw, kg, kb = jax.random.split(key, 4)
        x = jax.random.normal(kx, (B, L, dim), jnp.float32)
        w_expand = 0.1 * jax.random.normal(kw, (dim, 2 * dim), jnp.float32)
        gamma = 1.0 + 0.1 * jax.random.normal(kg, (dim // 2,), jnp.float32)
        beta = 0.1 * jax.random.normal(kb, (dim // 2,), jnp.float32)

        out = patch_expand_pallas(x, w_expand, gamma, beta, input_resolution=(H, W))
        out = jax.block_until_ready(out)
        assert out.shape == (B, 4 * L, dim // 2), out.shape
        assert bool(jnp.all(jnp.isfinite(out)))

        ref = _ref_patch_expand(x, w_expand, gamma, beta, (H, W))
        assert jnp.allclose(out, ref, atol=4e-2, rtol=4e-2), (
            f"mismatch (B={B},H={H},W={W},dim={dim}): "
            f"max_err={float(jnp.max(jnp.abs(out - ref)))}")

    root = jax.random.PRNGKey(0)
    k1, k2, k3 = jax.random.split(root, 3)
    _run_case(k1, B=2, H=16, W=16, dim=64)   # lane-dense slab + wrapper shuffle path
    _run_case(k2, B=2, H=8, W=8, dim=256)    # fused pixel-shuffle store path (c_out=128)
    _run_case(k3, B=1, H=12, W=12, dim=64)   # padded-rows path (144 rows -> 4 x 40 tiles)
    print("KERNEL_OK")
</pallas_src>

<mosaic_0001>
module attributes {stable_mosaic.version = 11 : i64} {
  func.func @_expand_ln_kernel(%arg0: i32, %arg1: memref<128x64xf32, #tpu.memory_space<vmem>>, %arg2: memref<64x128xbf16, #tpu.memory_space<vmem>>, %arg3: memref<128x128xbf16, #tpu.memory_space<vmem>>, %arg4: memref<1x128xf32, #tpu.memory_space<vmem>>, %arg5: memref<1x128xf32, #tpu.memory_space<vmem>>, %arg6: memref<128x128xf32, #tpu.memory_space<vmem>>) attributes {dimension_semantics = [#tpu.dimension_semantics<parallel>], iteration_bounds = array<i64: 4>, scalar_prefetch = 0 : i64, scratch_operands = 0 : i64, tpu.core_type = #tpu.core_type<tc>, window_params = [{transform_indices = @transform_0, window_bounds = array<i64: 128, 64>}, {pipeline_mode = #tpu.pipeline_mode<synchronous>, transform_indices = @transform_1, window_bounds = array<i64: 64, 128>}, {pipeline_mode = #tpu.pipeline_mode<synchronous>, transform_indices = @transform_2, window_bounds = array<i64: 128, 128>}, {pipeline_mode = #tpu.pipeline_mode<synchronous>, transform_indices = @transform_3, window_bounds = array<i64: 1, 128>}, {pipeline_mode = #tpu.pipeline_mode<synchronous>, transform_indices = @transform_4, window_bounds = array<i64: 1, 128>}, {transform_indices = @transform_5, window_bounds = array<i64: 128, 128>}]} {
    %c0 = arith.constant 0 : index
    %c0_0 = arith.constant 0 : index
    %0 = vector.load %arg1[%c0, %c0_0] : memref<128x64xf32, #tpu.memory_space<vmem>>, vector<128x64xf32>
    %1 = arith.truncf %0 : vector<128x64xf32> to vector<128x64xbf16>
    %c0_1 = arith.constant 0 : index
    %c0_2 = arith.constant 0 : index
    %2 = vector.load %arg2[%c0_1, %c0_2] : memref<64x128xbf16, #tpu.memory_space<vmem>>, vector<64x128xbf16>
    %cst = arith.constant dense<0.000000e+00> : vector<128x128xf32>
    %3 = tpu.matmul %1, %2, %cst {dimension_numbers = #tpu.dot_dimension_numbers<[1], [0], [0], [1], [0, 0, 1, 1], [], []>} : vector<128x64xbf16>, vector<64x128xbf16>, vector<128x128xf32> -> vector<128x128xf32>
    %4 = arith.mulf %3, %3 : vector<128x128xf32>
    %5 = arith.truncf %4 : vector<128x128xf32> to vector<128x128xbf16>
    %c0_3 = arith.constant 0 : index
    %c0_4 = arith.constant 0 : index
    %6 = vector.load %arg3[%c0_3, %c0_4] : memref<128x128xbf16, #tpu.memory_space<vmem>>, vector<128x128xbf16>
    %cst_5 = arith.constant dense<0.000000e+00> : vector<128x128xf32>
    %7 = tpu.matmul %5, %6, %cst_5 {dimension_numbers = #tpu.dot_dimension_numbers<[1], [0], [0], [1], [0, 0, 1, 1], [], []>} : vector<128x128xbf16>, vector<128x128xbf16>, vector<128x128xf32> -> vector<128x128xf32>
    %cst_6 = arith.constant 9.99999974E-6 : f32
    %8 = vector.broadcast %cst_6 : f32 to vector<128x128xf32>
    %9 = arith.addf %7, %8 : vector<128x128xf32>
    %10 = math.rsqrt %9 : vector<128x128xf32>
    %11 = arith.mulf %3, %10 : vector<128x128xf32>
    %c0_7 = arith.constant 0 : index
    %c0_8 = arith.constant 0 : index
    %12 = vector.load %arg4[%c0_7, %c0_8] : memref<1x128xf32, #tpu.memory_space<vmem>>, vector<1x128xf32>
    %13 = vector.broadcast %12 : vector<1x128xf32> to vector<128x128xf32>
    %14 = arith.mulf %11, %13 : vector<128x128xf32>
    %c0_9 = arith.constant 0 : index
    %c0_10 = arith.constant 0 : index
    %15 = vector.load %arg5[%c0_9, %c0_10] : memref<1x128xf32, #tpu.memory_space<vmem>>, vector<1x128xf32>
    %16 = vector.broadcast %15 : vector<1x128xf32> to vector<128x128xf32>
    %17 = arith.addf %14, %16 : vector<128x128xf32>
    %c0_11 = arith.constant 0 : index
    %c0_12 = arith.constant 0 : index
    %18 = vector.load %arg6[%c0_11, %c0_12] : memref<128x128xf32, #tpu.memory_space<vmem>>, vector<128x128xf32>
    tpu.vector_store %arg6[%c0_11, %c0_12], %17 {strides = array<i32>} : memref<128x128xf32, #tpu.memory_space<vmem>>, vector<128x128xf32>,
    return
  }
  func.func @transform_0(%arg0: i32) -> (i32, i32) {
    %c0_i32 = arith.constant 0 : i32
    %c0_i32_0 = arith.constant 0 : i32
    return %arg0, %c0_i32 : i32, i32
  }
  func.func @transform_1(%arg0: i32) -> (i32, i32) {
    %c0_i32 = arith.constant 0 : i32
    %c0_i32_0 = arith.constant 0 : i32
    %c0_i32_1 = arith.constant 0 : i32
    return %c0_i32, %c0_i32_0 : i32, i32
  }
  func.func @transform_2(%arg0: i32) -> (i32, i32) {
    %c0_i32 = arith.constant 0 : i32
    %c0_i32_0 = arith.constant 0 : i32
    %c0_i32_1 = arith.constant 0 : i32
    return %c0_i32, %c0_i32_0 : i32, i32
  }
  func.func @transform_3(%arg0: i32) -> (i32, i32) {
    %c0_i32 = arith.constant 0 : i32
    %c0_i32_0 = arith.constant 0 : i32
    %c0_i32_1 = arith.constant 0 : i32
    return %c0_i32, %c0_i32_0 : i32, i32
  }
  func.func @transform_4(%arg0: i32) -> (i32, i32) {
    %c0_i32 = arith.constant 0 : i32
    %c0_i32_0 = arith.constant 0 : i32
    %c0_i32_1 = arith.constant 0 : i32
    return %c0_i32, %c0_i32_0 : i32, i32
  }
  func.func @transform_5(%arg0: i32) -> (i32, i32) {
    %c0_i32 = arith.constant 0 : i32
    %c0_i32_0 = arith.constant 0 : i32
    return %arg0, %c0_i32 : i32, i32
  }
}

module attributes {stable_mosaic.version = 11 : i64} {
  func.func @_expand_ln_kernel(%arg0: i32, %arg1: memref<128x64xf32, #tpu.memory_space<vmem>>, %arg2: memref<64x128xbf16, #tpu.memory_space<vmem>>, %arg3: memref<128x128xbf16, #tpu.memory_space<vmem>>, %arg4: memref<1x128xf32, #tpu.memory_space<vmem>>, %arg5: memref<1x128xf32, #tpu.memory_space<vmem>>, %arg6: memref<128x128xf32, #tpu.memory_space<vmem>>) attributes {dimension_semantics = [#tpu.dimension_semantics<parallel>], iteration_bounds = array<i64: 4>, scalar_prefetch = 0 : i64, scratch_operands = 0 : i64, tpu.core_type = #tpu.core_type<tc>, window_params = [{transform_indices = @transform_0, window_bounds = array<i64: 128, 64>}, {pipeline_mode = #tpu.pipeline_mode<synchronous>, transform_indices = @transform_1, window_bounds = array<i64: 64, 128>}, {pipeline_mode = #tpu.pipeline_mode<synchronous>, transform_indices = @transform_2, window_bounds = array<i64: 128, 128>}, {pipeline_mode = #tpu.pipeline_mode<synchronous>, transform_indices = @transform_3, window_bounds = array<i64: 1, 128>}, {pipeline_mode = #tpu.pipeline_mode<synchronous>, transform_indices = @transform_4, window_bounds = array<i64: 1, 128>}, {transform_indices = @transform_5, window_bounds = array<i64: 128, 128>}]} {
    %c0 = arith.constant 0 : index
    %c0_0 = arith.constant 0 : index
    %0 = vector.load %arg1[%c0, %c0_0] : memref<128x64xf32, #tpu.memory_space<vmem>>, vector<128x64xf32>
    %1 = arith.truncf %0 : vector<128x64xf32> to vector<128x64xbf16>
    %c0_1 = arith.constant 0 : index
    %c0_2 = arith.constant 0 : index
    %2 = vector.load %arg2[%c0_1, %c0_2] : memref<64x128xbf16, #tpu.memory_space<vmem>>, vector<64x128xbf16>
    %cst = arith.constant dense<0.000000e+00> : vector<128x128xf32>
    %3 = tpu.matmul %1, %2, %cst {dimension_numbers = #tpu.dot_dimension_numbers<[1], [0], [0], [1], [0, 0, 1, 1], [], []>} : vector<128x64xbf16>, vector<64x128xbf16>, vector<128x128xf32> -> vector<128x128xf32>
    %4 = arith.mulf %3, %3 : vector<128x128xf32>
    %5 = arith.truncf %4 : vector<128x128xf32> to vector<128x128xbf16>
    %c0_3 = arith.constant 0 : index
    %c0_4 = arith.constant 0 : index
    %6 = vector.load %arg3[%c0_3, %c0_4] : memref<128x128xbf16, #tpu.memory_space<vmem>>, vector<128x128xbf16>
    %cst_5 = arith.constant dense<0.000000e+00> : vector<128x128xf32>
    %7 = tpu.matmul %5, %6, %cst_5 {dimension_numbers = #tpu.dot_dimension_numbers<[1], [0], [0], [1], [0, 0, 1, 1], [], []>} : vector<128x128xbf16>, vector<128x128xbf16>, vector<128x128xf32> -> vector<128x128xf32>
    %cst_6 = arith.constant 9.99999974E-6 : f32
    %8 = vector.broadcast %cst_6 : f32 to vector<128x128xf32>
    %9 = arith.addf %7, %8 : vector<128x128xf32>
    %10 = math.rsqrt %9 : vector<128x128xf32>
    %11 = arith.mulf %3, %10 : vector<128x128xf32>
    %c0_7 = arith.constant 0 : index
    %c0_8 = arith.constant 0 : index
    %12 = vector.load %arg4[%c0_7, %c0_8] : memref<1x128xf32, #tpu.memory_space<vmem>>, vector<1x128xf32>
    %13 = vector.broadcast %12 : vector<1x128xf32> to vector<128x128xf32>
    %14 = arith.mulf %11, %13 : vector<128x128xf32>
    %c0_9 = arith.constant 0 : index
    %c0_10 = arith.constant 0 : index
    %15 = vector.load %arg5[%c0_9, %c0_10] : memref<1x128xf32, #tpu.memory_space<vmem>>, vector<1x128xf32>
    %16 = vector.broadcast %15 : vector<1x128xf32> to vector<128x128xf32>
    %17 = arith.addf %14, %16 : vector<128x128xf32>
    %c0_11 = arith.constant 0 : index
    %c0_12 = arith.constant 0 : index
    %18 = vector.load %arg6[%c0_11, %c0_12] : memref<128x128xf32, #tpu.memory_space<vmem>>, vector<128x128xf32>
    tpu.vector_store %arg6[%c0_11, %c0_12], %17 {strides = array<i32>} : memref<128x128xf32, #tpu.memory_space<vmem>>, vector<128x128xf32>,
    return
  }
  func.func @transform_0(%arg0: i32) -> (i32, i32) {
    %c0_i32 = arith.constant 0 : i32
    %c0_i32_0 = arith.constant 0 : i32
    return %arg0, %c0_i32 : i32, i32
  }
  func.func @transform_1(%arg0: i32) -> (i32, i32) {
    %c0_i32 = arith.constant 0 : i32
    %c0_i32_0 = arith.constant 0 : i32
    %c0_i32_1 = arith.constant 0 : i32
    return %c0_i32, %c0_i32_0 : i32, i32
  }
  func.func @transform_2(%arg0: i32) -> (i32, i32) {
    %c0_i32 = arith.constant 0 : i32
    %c0_i32_0 = arith.constant 0 : i32
    %c0_i32_1 = arith.constant 0 : i32
    return %c0_i32, %c0_i32_0 : i32, i32
  }
  func.func @transform_3(%arg0: i32) -> (i32, i32) {
    %c0_i32 = arith.constant 0 : i32
    %c0_i32_0 = arith.constant 0 : i32
    %c0_i32_1 = arith.constant 0 : i32
    return %c0_i32, %c0_i32_0 : i32, i32
  }
  func.func @transform_4(%arg0: i32) -> (i32, i32) {
    %c0_i32 = arith.constant 0 : i32
    %c0_i32_0 = arith.constant 0 : i32
    %c0_i32_1 = arith.constant 0 : i32
    return %c0_i32, %c0_i32_0 : i32, i32
  }
  func.func @transform_5(%arg0: i32) -> (i32, i32) {
    %c0_i32 = arith.constant 0 : i32
    %c0_i32_0 = arith.constant 0 : i32
    return %arg0, %c0_i32 : i32, i32
  }
}

</mosaic_0001>

<bundles_post_ra>
// kernel: tpu_custom_call.1
= control target key start
LH: loop header
LB: loop body
LE: loop exit
PB: predicated region body
PF: predicated region fallthrough
CT: control target
= control target key end

     0   :  { %10 = vsyncpa [#allocation3], 0  ;;  %s1386_s0 = inlined_call_operand.vmem [shape: f32[512,64], index: 0, kind: input, shape index: {}]   ;;  %s1387_s1 = inlined_call_operand.vmem [shape: bf16[64,128], index: 1, kind: input, shape index: {}]   ;;  %s1388_s2 = inlined_call_operand.vmem [shape: bf16[128,128], index: 2, kind: input, shape index: {}]   ;;  %s1389_s3 = inlined_call_operand.vmem [shape: f32[1,128], index: 3, kind: input, shape index: {}]   ;;  %s1390_s4 = inlined_call_operand.vmem [shape: f32[1,128], index: 4, kind: input, shape index: {}]   ;;  %s1391_s5 = inlined_call_operand.hbm [shape: f32[512,128], index: 5, kind: output, shape index: {}]  }
   0x1   :  { %12 = vsyncpa [#allocation3 + $0x1], 0  ;;  %s1077_s18 = smov 0   ;;  %s1079_s19 = smov 0  }
   0x2   :  { %s1081_s20 = smov 0   ;;  %s1083_s21 = smov 0  }
   0x3 LB: > { %s1098_s22 = sadd.s32 4294967295, %s1042_s21   ;;  %s760_s23 = sadd.s32 4294967294, %s1042_s21   ;;  %s1042_s21 = sphi %s1083_s21, %s1397_s21   ;;  %s1038_s20 = sphi %s1081_s20, %s1396_s20   ;;  %s1034_s19 = sphi %s1079_s19, %s1395_s19   ;;  %s1030_s18 = sphi %s1077_s18, %s1394_s18  }
   0x4   : > { %s1102_s24 = sadd.s32 1, %s1042_s21   ;;  %s135_s25 = sadd.s32 1, %s1038_s20 }
   0x5   : > { %s132_s26 = ssub.s32 %s1042_s21, %s1102_s24  ;;  %p145_p0 = scmp.ne.s32.totalorder %s1038_s20, %s1034_s19 }
   0x6   : > { %p133_p1 = scmp.eq.s32.totalorder %s132_s26, 0  ;;  %p146_p2 = scmp.eq.s32.totalorder %s1098_s22, 3 }
   0x7   : > { %p151_p3 = scmp.ne.s32.totalorder %s1034_s19, %s1030_s18  ;;  %p152_p4 = scmp.eq.s32.totalorder %s760_s23, 3 }
   0x8   : > { %s1113_s27 = scalar_select %p133_p1, %s1038_s20, %s135_s25  }
   0x9   : > { %p1115_p5 = por %p146_p2, %p145_p0  ;;  %p1119_p6 = por %p152_p4, %p151_p3 }
   0xa   : > { %p763_p7 = scmp.ge.s32.totalorder %s1042_s21, 1  ;;  %p191_p8 = scmp.lt.s32.totalorder %s1042_s21, 5 }
   0xc   : > { %p192_p9 = pnand %p763_p7, %p191_p8 }
   0xd   : > { %v936_v0 = vld [vmem:[%s1387_s1] sm:$0xff] (!%p192_p9)   ;;  %s765_s7 = sshll.u32 (!%p192_p9), %s1098_s22, 4  ;;  %v937_v1 = vld [vmem:[%s1387_s1 + $0x8] sm:$0xff] (!%p192_p9)   ;;  %v938_v2 = vld [vmem:[%s1387_s1 + $0x10] sm:$0xff] (!%p192_p9)   ;;  %vm283_vm0 = vcmask (!%p192_p9), 523264   ;;  %s794_s9 = sshll.u32 (!%p192_p9), %s1098_s22, 11 }
   0xe   : > { %195 = sbr.rel (%p192_p9) target bundleno = 523 (0x20b), region = 40  ;;  %p220_p10 = scmp.lt.s32.totalorder (!%p192_p9), %s765_s7, 63  ;;  %823 = vmatprep.subr.bf16.mxu0 (!%p192_p9), %v936_v0  ;;  %v940_v3 = vld [vmem:[%s1388_s2] sm:$0xff] (!%p192_p9)   ;;  %v941_v4 = vld [vmem:[%s1388_s2 + $0x8] sm:$0xff] (!%p192_p9)   ;;  %v939_v7 = vld [vmem:[%s1387_s1 + $0x18] sm:$0xff] (!%p192_p9)  }
   0xf   : > { %824 = vmatpush3.bf16.msra.mxu0 (!%p192_p9), %v936_v0  ;;  %879 = vmatprep.subr.bf16.mxu1 (!%p192_p9), %v940_v3  ;;  %v942_v9 = vld [vmem:[%s1388_s2 + $0x10] sm:$0xff] (!%p192_p9)   ;;  %v943_v15 = vld [vmem:[%s1388_s2 + $0x18] sm:$0xff] (!%p192_p9)   ;;  %v944_v19 = vld [vmem:[%s1388_s2 + $0x20] sm:$0xff] (!%p192_p9)   ;;  %s1335_s13 = scalar_lea.hbm (!%p192_p9), %s1391_s5, %s794_s9  ;;  %s1044_s15 = smov (!%p192_p9), [#allocation2]  }
  0x10   : > { %825 = vmatprep.subr.bf16.mxu0 (!%p192_p9), %v937_v1  ;;  %887 = vmatpush3.bf16.msra.mxu1 (!%p192_p9), %v940_v3  ;;  %v945_v24 = vld [vmem:[%s1388_s2 + $0x28] sm:$0xff] (!%p192_p9)   ;;  %v946_v34 = vld [vmem:[%s1388_s2 + $0x30] sm:$0xff] (!%p192_p9)   ;;  %v947_v35 = vld [vmem:[%s1388_s2 + $0x38] sm:$0xff] (!%p192_p9)   ;;  %s984_s16 = sshll.u32 (!%p192_p9), %s1044_s15, 4  ;;  %s985_s16 = int_to_ptr.vmem [resolvable:$false] %s984_s16 }
  0x11   : > { %880 = vmatprep.subr.bf16.mxu1 (!%p192_p9), %v941_v4  ;;  %s986_s23 = scalar_lea.vmem (!%p192_p9), %s985_s16, 4096 }
  0x13   : > { %826 = vmatpush3.bf16.msra.mxu0 (!%p192_p9), %v937_v1 }
  0x14   : > { %827 = vmatprep.subr.bf16.mxu0 (!%p192_p9), %v938_v2  ;;  %888 = vmatpush3.bf16.msra.mxu1 (!%p192_p9), %v941_v4 }
  0x15   : > { %s1399_s7 = smov (!%p220_p10, %s765_s7), 63  ;;  %881 = vmatprep.subr.bf16.mxu1 %v942_v9 }
  0x16   : > { %s766_s14 = sshll.u32 %s1399_s7, 3 }
  0x17   : > { %s1141_s17 = scalar_lea.vmem %s1386_s0, %s766_s14  ;;  %828 = vmatpush3.bf16.msra.mxu0 %v938_v2 }
  0x18   : > { %v227_v5 = vld [vmem:[%s1141_s17] sm:$0xff]  ;;  %v228_v6 = vld [vmem:[%s1141_s17 + $0x8] sm:$0xff]  ;;  %v229_v10 = vld [vmem:[%s1141_s17 + $0x10] sm:$0xff]  ;;  %829 = vmatprep.subr.bf16.mxu0 %v939_v7  ;;  %889 = vmatpush3.bf16.msra.mxu1 %v942_v9 }
  0x19   : > { %v243_v8 = vpack.c.bf16 %v228_v6, %v227_v5  ;;  %v230_v11 = vld [vmem:[%s1141_s17 + $0x18] sm:$0xff]  ;;  %v231_v12 = vld [vmem:[%s1141_s17 + $0x20] sm:$0xff]  ;;  %v232_v13 = vld [vmem:[%s1141_s17 + $0x28] sm:$0xff]  ;;  %882 = vmatprep.subr.bf16.mxu1 %v943_v15 }
  0x1a   : > { %v244_v14 = vpack.c.bf16 %v230_v11, %v229_v10  ;;  %v245_v16 = vpack.c.bf16 %v232_v13, %v231_v12  ;;  %v233_v17 = vld [vmem:[%s1141_s17 + $0x30] sm:$0xff]  ;;  %v234_v18 = vld [vmem:[%s1141_s17 + $0x38] sm:$0xff]  ;;  %v235_v20 = vld [vmem:[%s1141_s17 + $0x40] sm:$0xff] }
  0x1b   : > { %831 = vmatprep.mubr.msk.bf16.mxu0 %vm283_vm0, %v243_v8  ;;  %830 = vmatpush3.bf16.msra.mxu0 %v939_v7  ;;  %v236_v21 = vld [vmem:[%s1141_s17 + $0x48] sm:$0xff]  ;;  %v246_v22 = vpack.c.bf16 %v234_v18, %v233_v17  ;;  %v237_v25 = vld [vmem:[%s1141_s17 + $0x50] sm:$0xff]  ;;  %v238_v26 = vld [vmem:[%s1141_s17 + $0x58] sm:$0xff] }
  0x1c   : > { %847 = vmatprep.subr.bf16.mxu0 %v940_v3  ;;  %890 = vmatpush3.bf16.msra.mxu1 %v943_v15  ;;  %v247_v23 = vpack.c.bf16 %v236_v21, %v235_v20  ;;  %v239_v27 = vld [vmem:[%s1141_s17 + $0x60] sm:$0xff]  ;;  %v240_v28 = vld [vmem:[%s1141_s17 + $0x68] sm:$0xff]  ;;  %v248_v29 = vpack.c.bf16 %v238_v26, %v237_v25  ;;  %v241_v31 = vld [vmem:[%s1141_s17 + $0x70] sm:$0xff] }
  0x1d   : > { %883 = vmatprep.subr.bf16.mxu1 %v944_v19  ;;  %v249_v30 = vpack.c.bf16 %v240_v28, %v239_v27  ;;  %v242_v32 = vld [vmem:[%s1141_s17 + $0x78] sm:$0xff]  ;;  %s216_s17 = sand.u32 1, %s1034_s19  }
  0x1e   : > { %832 = vmatmul.mubr.msk.bf16.vlgmr.msra.gmra.mrb[0].mxu0 %vm283_vm0, %v244_v14  ;;  %v250_v33 = vpack.c.bf16 %v242_v32, %v241_v31  ;;  %s764_s30 = sshll.u32 %s216_s17, 7  ;;  %s1345_s22 = scalar_lea.sflag [#allocation3], %s216_s17 }
  0x1f   : > { %835 = vmatprep.mubr.msk.bf16.mxu0 %vm283_vm0, %v245_v16  ;;  %848 = vmatpush3.bf16.msra.mxu0 %v940_v3  ;;  %s1278_s8 = scalar_lea.vmem [#allocation2], %s764_s30 }
  0x20   : > { %849 = vmatprep.subr.bf16.mxu0 %v941_v4  ;;  %891 = vmatpush3.bf16.msra.mxu1 %v944_v19  ;;  %s698_s10 = sshll.u32 %s1278_s8, 4  ;;  %s1337_s10 = int_to_ptr.vmem [resolvable:$true] %s698_s10 }
  0x21   : > { %884 = vmatprep.subr.bf16.mxu1 %v945_v24  ;;  %s980_s14 = scalar_lea.vmem %s1337_s10, 2048  ;;  %p987_p0 = scmp.lt.s32.totalorder %s1337_s10, %s985_s16 }
  0x22   : > { %p981_p11 = scmp.ne.s32.totalorder %s1337_s10, %s980_s14  ;;  %p988_p1 = scmp.lt.s32.totalorder %s986_s23, %s980_s14 }
  0x23   : > { %850 = vmatpush3.bf16.msra.mxu0 %v941_v4 }
  0x24   : > { %851 = vmatprep.subr.bf16.mxu0 %v942_v9  ;;  %892 = vmatpush3.bf16.msra.mxu1 %v945_v24  ;;  %p982_p12 = pnand %p981_p11, %p1115_p5  ;;  %p989_p2 = por %p988_p1, %p987_p0 }
  0x25   : > { %885 = vmatprep.subr.bf16.mxu1 %v946_v34 }
  0x26   : > { %836 = vmatmul.mubr.msk.bf16.gmra.mrb[4].mxu0 %vm283_vm0, %v246_v22  ;;  %p983_p13 = pneg %p982_p12 }
  0x27   : > { %839 = vmatprep.mubr.msk.bf16.mxu0 %vm283_vm0, %v247_v23  ;;  %852 = vmatpush3.bf16.msra.mxu0 %v942_v9 }
  0x28   : > { %853 = vmatprep.subr.bf16.mxu0 %v943_v15  ;;  %893 = vmatpush3.bf16.msra.mxu1 %v946_v34  ;;  %p990_p3 = pnand %p989_p2, %p983_p13 }
  0x29   : > { %886 = vmatprep.subr.bf16.mxu1 %v947_v35 }
  0x2b   : > { %854 = vmatpush3.bf16.msra.mxu0 %v943_v15 }
  0x2c   : > { %855 = vmatprep.subr.bf16.mxu0 %v944_v19  ;;  %894 = vmatpush3.bf16.msra.mxu1 %v947_v35 }
  0x2e   : > { %840 = vmatmul.mubr.msk.bf16.gmra.mrb[8].mxu0 %vm283_vm0, %v248_v29  ;;  %v1259_v29 = vld [vmem:[%s1389_s3] ss:$0 sm:$0xff] }
  0x2f   : > { %843 = vmatprep.mubr.msk.bf16.mxu0 %vm283_vm0, %v249_v30  ;;  %856 = vmatpush3.bf16.msra.mxu0 %v944_v19 }
  0x30   : > { %857 = vmatprep.subr.bf16.mxu0 %v945_v24 }
  0x33   : > { %858 = vmatpush3.bf16.msra.mxu0 %v945_v24 }
  0x34   : > { %859 = vmatprep.subr.bf16.mxu0 %v946_v34 }
  0x36   : > { %844 = vmatmul.mubr.msk.bf16.gmra.mrb[12].mxu0 %vm283_vm0, %v250_v33  ;;  %v1267_v33 = vld [vmem:[%s1390_s4] ss:$0 sm:$0xff] }
  0x37   : > { %860 = vmatpush3.bf16.msra.mxu0 %v946_v34 }
  0x38   : > { %861 = vmatprep.subr.bf16.mxu0 %v947_v35 }
  0x3b   : > { %862 = vmatpush3.bf16.msra.mxu0 %v947_v35 }
  0xf1   : > { %v1191_v36 = vpop.f32.mrb[0].mxu0 }
  0xf2   : > { %v1193_v37 = vpop.f32.mrb[1].mxu0  ;;  %v407_v39 = vmul.f32 %v1191_v36, %v1191_v36 }
  0xf3   : > { %v1195_v38 = vpop.f32.mrb[2].mxu0  ;;  %v405_v42 = vmul.f32 %v1193_v37, %v1193_v37 }
  0xf4   : > { %v408_v40 = vmul.f32 %v1195_v38, %v1195_v38  ;;  %v1201_v41 = vpop.f32.mrb[3].mxu0 }
  0xf5   : > { %v406_v43 = vmul.f32 %v1201_v41, %v1201_v41 }
  0xf6   : > { %v422_v44 = vpack.c.bf16 %v408_v40, %v407_v39 }
  0xf7   : > { %v421_v45 = vpack.c.bf16 %v406_v43, %v405_v42 }
  0xf9   : > { %v1207_v46 = vpop.f32.mrb[4].mxu0  ;;  %863 = vmatprep.mubr.bf16.mxu0 %v421_v45 }
  0xfa   : > { %v1209_v47 = vpop.f32.mrb[5].mxu0  ;;  %864 = vmatmul.mubr.bf16.vlgmr.msra.gmra.mrb[16].mxu0 %v422_v44  ;;  %v411_v49 = vmul.f32 %v1207_v46, %v1207_v46 }
  0xfb   : > { %v1211_v48 = vpop.f32.mrb[6].mxu0  ;;  %v409_v52 = vmul.f32 %v1209_v47, %v1209_v47 }
  0xfc   : > { %v412_v50 = vmul.f32 %v1211_v48, %v1211_v48  ;;  %v1217_v51 = vpop.f32.mrb[7].mxu0 }
  0xfd   : > { %v410_v53 = vmul.f32 %v1217_v51, %v1217_v51 }
  0xfe   : > { %v424_v54 = vpack.c.bf16 %v412_v50, %v411_v49 }
  0xff   : > { %v423_v55 = vpack.c.bf16 %v410_v53, %v409_v52 }
 0x101   : > { %v1223_v56 = vpop.f32.mrb[8].mxu0  ;;  %867 = vmatprep.mubr.bf16.mxu1 %v423_v55 }
 0x102   : > { %v1225_v57 = vpop.f32.mrb[9].mxu0  ;;  %868 = vmatmul.mubr.bf16.vlgmr.msra.gmra.mrb[0].mxu1 %v424_v54  ;;  %v415_v59 = vmul.f32 %v1223_v56, %v1223_v56 }
 0x103   : > { %v1227_v58 = vpop.f32.mrb[10].mxu0  ;;  %v413_v62 = vmul.f32 %v1225_v57, %v1225_v57 }
 0x104   : > { %v416_v60 = vmul.f32 %v1227_v58, %v1227_v58  ;;  %v1233_v61 = vpop.f32.mrb[11].mxu0 }
 0x105   : > { %v414_v63 = vmul.f32 %v1233_v61, %v1233_v61 }
 0x106   : > { %v426_v0 = vpack.c.bf16 %v416_v60, %v415_v59 }
 0x107   : > { %v425_v1 = vpack.c.bf16 %v414_v63, %v413_v62 }
 0x109   : > { %v1239_v2 = vpop.f32.mrb[12].mxu0  ;;  %871 = vmatprep.mubr.bf16.mxu1 %v425_v1 }
 0x10a   : > { %v1241_v3 = vpop.f32.mrb[13].mxu0  ;;  %872 = vmatmul.mubr.bf16.gmra.mrb[4].mxu1 %v426_v0  ;;  %v419_v5 = vmul.f32 %v1239_v2, %v1239_v2 }
 0x10b   : > { %v1243_v4 = vpop.f32.mrb[14].mxu0  ;;  %v417_v8 = vmul.f32 %v1241_v3, %v1241_v3 }
 0x10c   : > { %v420_v6 = vmul.f32 %v1243_v4, %v1243_v4  ;;  %v1249_v7 = vpop.f32.mrb[15].mxu0 }
 0x10d   : > { %v418_v9 = vmul.f32 %v1249_v7, %v1249_v7 }
 0x10e   : > { %v428_v10 = vpack.c.bf16 %v420_v6, %v419_v5 }
 0x10f   : > { %v427_v11 = vpack.c.bf16 %v418_v9, %v417_v8 }
 0x111   : > { %875 = vmatprep.mubr.bf16.mxu1 %v427_v11 }
 0x112   : > { %876 = vmatmul.mubr.bf16.gmra.mrb[8].mxu1 %v428_v10 }
 0x1cd   : > { %v865_v12 = vpop.f32.mrb[16].mxu0 }
 0x1ce   : > { %v536_v13 = vadd.f32 1e-05, %v865_v12  ;;  %v527_v14 = vpop.f32.mrb[17].mxu0 }
 0x1cf   : > { %v528_v15 = vadd.f32 1e-05, %v527_v14  ;;  %v866_v16 = vpop.f32.mrb[18].mxu0 }
 0x1d0   : > { %948 = vrsqrt.f32 %v536_v13  ;;  %v539_v17 = vadd.f32 1e-05, %v866_v16  ;;  %v530_v18 = vpop.f32.mrb[19].mxu0 }
 0x1d1   : > { %950 = vrsqrt.f32 %v528_v15  ;;  %v531_v19 = vadd.f32 1e-05, %v530_v18 }
 0x1d2   : > { %952 = vrsqrt.f32 %v539_v17 }
 0x1d3   : > { %954 = vrsqrt.f32 %v531_v19 }
 0x1d5   : > { %v869_v20 = vpop.f32.mrb[0].mxu1 }
 0x1d6   : > { %v552_v21 = vadd.f32 1e-05, %v869_v20  ;;  %v543_v22 = vpop.f32.mrb[1].mxu1 }
 0x1d7   : > { %v544_v23 = vadd.f32 1e-05, %v543_v22  ;;  %v870_v24 = vpop.f32.mrb[2].mxu1 }
 0x1d8   : > { %956 = vrsqrt.f32 %v552_v21  ;;  %v555_v25 = vadd.f32 1e-05, %v870_v24  ;;  %v546_v26 = vpop.f32.mrb[3].mxu1 }
 0x1d9   : > { %958 = vrsqrt.f32 %v544_v23  ;;  %v547_v27 = vadd.f32 1e-05, %v546_v26 }
 0x1da   : > { %v949_v28 = vpop.eup %948  ;;  %960 = vrsqrt.f32 %v555_v25 }
 0x1db   : > { %v951_v30 = vpop.eup %950  ;;  %v608_v31 = vmul.f32 %v949_v28, %v1191_v36  ;;  %962 = vrsqrt.f32 %v547_v27 }
 0x1dc   : > { %v953_v32 = vpop.eup %952  ;;  %v606_v34 = vmul.f32 %v951_v30, %v1193_v37 }
 0x1dd   : > { %v955_v35 = vpop.eup %954  ;;  %v631_v39 = vmul.f32 %v1259_v29, %v608_v31  ;;  %v609_v40 = vmul.f32 %v953_v32, %v1195_v38  ;;  %v873_v42 = vpop.f32.mrb[4].mxu1 }
 0x1de   : > { %v629_v43 = vmul.f32 %v1259_v29, %v606_v34  ;;  %v607_v44 = vmul.f32 %v955_v35, %v1201_v41  ;;  %v568_v36 = vadd.f32 1e-05, %v873_v42  ;;  %v559_v45 = vpop.f32.mrb[5].mxu1 }
 0x1df   : > { %v654_v49 = vadd.f32 %v1267_v33, %v631_v39  ;;  %v632_v50 = vmul.f32 %v1259_v29, %v609_v40  ;;  %v560_v52 = vadd.f32 1e-05, %v559_v45  ;;  %v874_v53 = vpop.f32.mrb[6].mxu1 }
 0x1e0   : > { %v652_v37 = vadd.f32 %v1267_v33, %v629_v43  ;;  %v630_v54 = vmul.f32 %v1259_v29, %v607_v44  ;;  %964 = vrsqrt.f32 %v568_v36  ;;  %v571_v55 = vadd.f32 1e-05, %v874_v53  ;;  %v562_v38 = vpop.f32.mrb[7].mxu1 }
 0x1e1   : > { %670 = vst [vmem:[%s1278_s8 + $0x10] sm:$0xff] %v654_v49  ;;  %v655_v41 = vadd.f32 %v1267_v33, %v632_v50  ;;  %966 = vrsqrt.f32 %v560_v52  ;;  %v563_v59 = vadd.f32 1e-05, %v562_v38 }
 0x1e2   : > { %v957_v60 = vpop.eup %956  ;;  %668 = vst [vmem:[%s1278_s8] sm:$0xff] %v652_v37  ;;  %v653_v62 = vadd.f32 %v1267_v33, %v630_v54  ;;  %968 = vrsqrt.f32 %v571_v55 }
 0x1e3   : > { %v959_v63 = vpop.eup %958  ;;  %671 = vst [vmem:[%s1278_s8 + $0x18] sm:$0xff] %v655_v41  ;;  %v612_v0 = vmul.f32 %v957_v60, %v1207_v46  ;;  %970 = vrsqrt.f32 %v563_v59 }
 0x1e4   : > { %v961_v1 = vpop.eup %960  ;;  %669 = vst [vmem:[%s1278_s8 + $0x8] sm:$0xff] %v653_v62  ;;  %v610_v5 = vmul.f32 %v959_v63, %v1209_v47 }
 0x1e5   : > { %v963_v6 = vpop.eup %962  ;;  %v635_v8 = vmul.f32 %v1259_v29, %v612_v0  ;;  %v613_v9 = vmul.f32 %v961_v1, %v1211_v48  ;;  %v877_v10 = vpop.f32.mrb[8].mxu1 }
 0x1e6   : > { %v633_v11 = vmul.f32 %v1259_v29, %v610_v5  ;;  %v611_v12 = vmul.f32 %v963_v6, %v1217_v51  ;;  %v584_v13 = vadd.f32 1e-05, %v877_v10  ;;  %v575_v14 = vpop.f32.mrb[9].mxu1 }
 0x1e7   : > { %v658_v46 = vadd.f32 %v1267_v33, %v635_v8  ;;  %v636_v15 = vmul.f32 %v1259_v29, %v613_v9  ;;  %v576_v16 = vadd.f32 1e-05, %v575_v14  ;;  %v878_v47 = vpop.f32.mrb[10].mxu1 }
 0x1e8   : > { %v656_v17 = vadd.f32 %v1267_v33, %v633_v11  ;;  %v634_v18 = vmul.f32 %v1259_v29, %v611_v12  ;;  %972 = vrsqrt.f32 %v584_v13  ;;  %v587_v48 = vadd.f32 1e-05, %v878_v47  ;;  %v578_v19 = vpop.f32.mrb[11].mxu1 }
 0x1e9   : > { %674 = vst [vmem:[%s1278_s8 + $0x30] sm:$0xff] %v658_v46  ;;  %v659_v51 = vadd.f32 %v1267_v33, %v636_v15  ;;  %974 = vrsqrt.f32 %v576_v16  ;;  %v579_v20 = vadd.f32 1e-05, %v578_v19 }
 0x1ea   : > { %v965_v21 = vpop.eup %964  ;;  %672 = vst [vmem:[%s1278_s8 + $0x20] sm:$0xff] %v656_v17  ;;  %v657_v22 = vadd.f32 %v1267_v33, %v634_v18  ;;  %976 = vrsqrt.f32 %v587_v48 }
 0x1eb   : > { %v967_v23 = vpop.eup %966  ;;  %675 = vst [vmem:[%s1278_s8 + $0x38] sm:$0xff] %v659_v51  ;;  %v616_v24 = vmul.f32 %v965_v21, %v1223_v56  ;;  %978 = vrsqrt.f32 %v579_v20 }
 0x1ec   : > { %v969_v25 = vpop.eup %968  ;;  %673 = vst [vmem:[%s1278_s8 + $0x28] sm:$0xff] %v657_v22  ;;  %v614_v26 = vmul.f32 %v967_v23, %v1225_v57 }
 0x1ed   : > { %v971_v27 = vpop.eup %970  ;;  %v639_v28 = vmul.f32 %v1259_v29, %v616_v24  ;;  %v617_v30 = vmul.f32 %v969_v25, %v1227_v58 }
 0x1ee   : > { %v637_v31 = vmul.f32 %v1259_v29, %v614_v26  ;;  %v615_v32 = vmul.f32 %v971_v27, %v1233_v61 }
 0x1ef   : > { %v662_v34 = vadd.f32 %v1267_v33, %v639_v28  ;;  %v640_v56 = vmul.f32 %v1259_v29, %v617_v30 }
 0x1f0   : > { %v660_v35 = vadd.f32 %v1267_v33, %v637_v31  ;;  %v638_v39 = vmul.f32 %v1259_v29, %v615_v32 }
 0x1f1   : > { %678 = vst [vmem:[%s1278_s8 + $0x50] sm:$0xff] %v662_v34  ;;  %v663_v57 = vadd.f32 %v1267_v33, %v640_v56 }
 0x1f2   : > { %v973_v40 = vpop.eup %972  ;;  %676 = vst [vmem:[%s1278_s8 + $0x40] sm:$0xff] %v660_v35  ;;  %v661_v58 = vadd.f32 %v1267_v33, %v638_v39 }
 0x1f3   : > { %v975_v42 = vpop.eup %974  ;;  %679 = vst [vmem:[%s1278_s8 + $0x58] sm:$0xff] %v663_v57  ;;  %v620_v61 = vmul.f32 %v973_v40, %v1239_v2 }
 0x1f4   : > { %v977_v43 = vpop.eup %976  ;;  %677 = vst [vmem:[%s1278_s8 + $0x48] sm:$0xff] %v661_v58  ;;  %v618_v44 = vmul.f32 %v975_v42, %v1241_v3 }
 0x1f5   : > { %v979_v36 = vpop.eup %978  ;;  %v643_v45 = vmul.f32 %v1259_v29, %v620_v61  ;;  %v621_v49 = vmul.f32 %v977_v43, %v1243_v4 }
 0x1f6   : > { %v641_v50 = vmul.f32 %v1259_v29, %v618_v44  ;;  %v619_v52 = vmul.f32 %v979_v36, %v1249_v7 }
 0x1f7   : > { %v666_v2 = vadd.f32 %v1267_v33, %v643_v45  ;;  %v644_v3 = vmul.f32 %v1259_v29, %v621_v49 }
 0x1f8   : > { %v664_v53 = vadd.f32 %v1267_v33, %v641_v50  ;;  %v642_v37 = vmul.f32 %v1259_v29, %v619_v52 }
 0x1f9   : > { %682 = vst [vmem:[%s1278_s8 + $0x70] sm:$0xff] %v666_v2  ;;  %v667_v4 = vadd.f32 %v1267_v33, %v644_v3 }
 0x1fa   : > { %680 = vst [vmem:[%s1278_s8 + $0x60] sm:$0xff] %v664_v53  ;;  %v665_v7 = vadd.f32 %v1267_v33, %v642_v37 }
 0x1fb   : > { %683 = vst [vmem:[%s1278_s8 + $0x78] sm:$0xff] %v667_v4 }
 0x1fc   : > { %681 = vst [vmem:[%s1278_s8 + $0x68] sm:$0xff] %v665_v7 }
 0x1fd   : > { %993 = shalt.err (!%p990_p3)
}
 0x1fe   : > { %s994_s17 = scalar_lea.hbm %s1335_s13, 2048  ;;  %s998_s30 = scalar_lea.hbm %s1391_s5, 8192 }
 0x1ff   : > { %p995_p4 = scmp.ne.s32.totalorder %s1335_s13, %s994_s17  ;;  %p999_p9 = scmp.lt.u32.totalorder %s1335_s13, %s1391_s5 }
 0x200   : > { %p1000_p10 = scmp.lt.u32.totalorder %s998_s30, %s994_s17  ;;  %p1002_p12 = scmp.lt.u32.totalorder %s994_s17, %s1335_s13 }
 0x201   : > { %p996_p7 = pnand %p995_p4, %p1115_p5 }
 0x202   : > { %p1001_p11 = por %p1000_p10, %p999_p9 }
 0x203   : > { %p997_p8 = pneg %p996_p7 }
 0x204   : > { %p1003_p13 = por %p1002_p12, %p1001_p11 }
 0x206   : > { %p1004_p0 = pnand %p1003_p13, %p997_p8 }
 0x208   : > { %1007 = shalt.err (!%p1004_p0)
}
 0x209   : > { %s1045_s8 = smov 128   ;;  %s1046_s9 = smov 8  }
 0x20a   : > { %895 = dma.vmem_to_hbm [thread:$0]  (%p1115_p5), %s1337_s10, 2048, %s1335_s13, %s1345_s22, %s1045_s8, %s1045_s8, %s1046_s9  }
 0x20b PF: > { %p901_p1 = scmp.ge.s32.totalorder %s1042_s21, 2  ;;  %s713_s11 = sand.u32 1, %s1030_s18  }
 0x20c   : > { %s714_s12 = scalar_lea.sflag [#allocation3], %s713_s11 }
 0x20d   : > { %p898_p2 = pnand %p901_p1, %p1119_p6 }
 0x20f   : > { %1025 = dma.done.wait (!%p898_p2), %s714_s12, 2048  }
 0x210   : > { %1027 = vsyncadd (!%p898_p2), %s714_s12, 4294965248  ;;  %p15_p3 = scmp.ge.s32.totalorder %s1102_s24, 6   ;;  %s1394_s18 = smov %s1034_s19 }
 0x211   : > { %s1395_s19 = smov %s1038_s20  ;;  %s1396_s20 = smov %s1113_s27 }
 0x212   : > { %s1397_s21 = smov %s1102_s24  ;;  %17 = sbr.rel (!%p15_p3) target bundleno = 3 (0x3), region = 75 }
 0x219   :  { %719 = vsyncpa [#allocation3], 1 }
 0x21a   :  { %721 = vsyncpa [#allocation3 + $0x1], 1 }

// kernel: tpu_custom_call.1
= control target key start
LH: loop header
LB: loop body
LE: loop exit
PB: predicated region body
PF: predicated region fallthrough
CT: control target
= control target key end

     0   :  { %10 = vsyncpa [#allocation3], 0  ;;  %s1386_s0 = inlined_call_operand.vmem [shape: f32[512,64], index: 0, kind: input, shape index: {}]   ;;  %s1387_s1 = inlined_call_operand.vmem [shape: bf16[64,128], index: 1, kind: input, shape index: {}]   ;;  %s1388_s2 = inlined_call_operand.vmem [shape: bf16[128,128], index: 2, kind: input, shape index: {}]   ;;  %s1389_s3 = inlined_call_operand.vmem [shape: f32[1,128], index: 3, kind: input, shape index: {}]   ;;  %s1390_s4 = inlined_call_operand.vmem [shape: f32[1,128], index: 4, kind: input, shape index: {}]   ;;  %s1391_s5 = inlined_call_operand.hbm [shape: f32[512,128], index: 5, kind: output, shape index: {}]  }
   0x1   :  { %12 = vsyncpa [#allocation3 + $0x1], 0  ;;  %s1077_s18 = smov 0   ;;  %s1079_s19 = smov 0  }
   0x2   :  { %s1081_s20 = smov 0   ;;  %s1083_s21 = smov 0  }
   0x3 LB: > { %s1098_s22 = sadd.s32 4294967295, %s1042_s21   ;;  %s760_s23 = sadd.s32 4294967294, %s1042_s21   ;;  %s1042_s21 = sphi %s1083_s21, %s1397_s21   ;;  %s1038_s20 = sphi %s1081_s20, %s1396_s20   ;;  %s1034_s19 = sphi %s1079_s19, %s1395_s19   ;;  %s1030_s18 = sphi %s1077_s18, %s1394_s18  }
   0x4   : > { %s1102_s24 = sadd.s32 1, %s1042_s21   ;;  %s135_s25 = sadd.s32 1, %s1038_s20 }
   0x5   : > { %s132_s26 = ssub.s32 %s1042_s21, %s1102_s24  ;;  %p145_p0 = scmp.ne.s32.totalorder %s1038_s20, %s1034_s19 }
   0x6   : > { %p133_p1 = scmp.eq.s32.totalorder %s132_s26, 0  ;;  %p146_p2 = scmp.eq.s32.totalorder %s1098_s22, 3 }
   0x7   : > { %p151_p3 = scmp.ne.s32.totalorder %s1034_s19, %s1030_s18  ;;  %p152_p4 = scmp.eq.s32.totalorder %s760_s23, 3 }
   0x8   : > { %s1113_s27 = scalar_select %p133_p1, %s1038_s20, %s135_s25  }
   0x9   : > { %p1115_p5 = por %p146_p2, %p145_p0  ;;  %p1119_p6 = por %p152_p4, %p151_p3 }
   0xa   : > { %p763_p7 = scmp.ge.s32.totalorder %s1042_s21, 1  ;;  %p191_p8 = scmp.lt.s32.totalorder %s1042_s21, 5 }
   0xc   : > { %p192_p9 = pnand %p763_p7, %p191_p8 }
   0xd   : > { %v936_v0 = vld [vmem:[%s1387_s1] sm:$0xff] (!%p192_p9)   ;;  %s765_s7 = sshll.u32 (!%p192_p9), %s1098_s22, 4  ;;  %v937_v1 = vld [vmem:[%s1387_s1 + $0x8] sm:$0xff] (!%p192_p9)   ;;  %v938_v2 = vld [vmem:[%s1387_s1 + $0x10] sm:$0xff] (!%p192_p9)   ;;  %vm283_vm0 = vcmask (!%p192_p9), 523264   ;;  %s794_s9 = sshll.u32 (!%p192_p9), %s1098_s22, 11 }
   0xe   : > { %195 = sbr.rel (%p192_p9) target bundleno = 523 (0x20b), region = 40  ;;  %p220_p10 = scmp.lt.s32.totalorder (!%p192_p9), %s765_s7, 63  ;;  %823 = vmatprep.subr.bf16.mxu0 (!%p192_p9), %v936_v0  ;;  %v940_v3 = vld [vmem:[%s1388_s2] sm:$0xff] (!%p192_p9)   ;;  %v941_v4 = vld [vmem:[%s1388_s2 + $0x8] sm:$0xff] (!%p192_p9)   ;;  %v939_v7 = vld [vmem:[%s1387_s1 + $0x18] sm:$0xff] (!%p192_p9)  }
   0xf   : > { %824 = vmatpush3.bf16.msra.mxu0 (!%p192_p9), %v936_v0  ;;  %879 = vmatprep.subr.bf16.mxu1 (!%p192_p9), %v940_v3  ;;  %v942_v9 = vld [vmem:[%s1388_s2 + $0x10] sm:$0xff] (!%p192_p9)   ;;  %v943_v15 = vld [vmem:[%s1388_s2 + $0x18] sm:$0xff] (!%p192_p9)   ;;  %v944_v19 = vld [vmem:[%s1388_s2 + $0x20] sm:$0xff] (!%p192_p9)   ;;  %s1335_s13 = scalar_lea.hbm (!%p192_p9), %s1391_s5, %s794_s9  ;;  %s1044_s15 = smov (!%p192_p9), [#allocation2]  }
  0x10   : > { %825 = vmatprep.subr.bf16.mxu0 (!%p192_p9), %v937_v1  ;;  %887 = vmatpush3.bf16.msra.mxu1 (!%p192_p9), %v940_v3  ;;  %v945_v24 = vld [vmem:[%s1388_s2 + $0x28] sm:$0xff] (!%p192_p9)   ;;  %v946_v34 = vld [vmem:[%s1388_s2 + $0x30] sm:$0xff] (!%p192_p9)   ;;  %v947_v35 = vld [vmem:[%s1388_s2 + $0x38] sm:$0xff] (!%p192_p9)   ;;  %s984_s16 = sshll.u32 (!%p192_p9), %s1044_s15, 4  ;;  %s985_s16 = int_to_ptr.vmem [resolvable:$false] %s984_s16 }
  0x11   : > { %880 = vmatprep.subr.bf16.mxu1 (!%p192_p9), %v941_v4  ;;  %s986_s23 = scalar_lea.vmem (!%p192_p9), %s985_s16, 4096 }
  0x13   : > { %826 = vmatpush3.bf16.msra.mxu0 (!%p192_p9), %v937_v1 }
  0x14   : > { %827 = vmatprep.subr.bf16.mxu0 (!%p192_p9), %v938_v2  ;;  %888 = vmatpush3.bf16.msra.mxu1 (!%p192_p9), %v941_v4 }
  0x15   : > { %s1399_s7 = smov (!%p220_p10, %s765_s7), 63  ;;  %881 = vmatprep.subr.bf16.mxu1 %v942_v9 }
  0x16   : > { %s766_s14 = sshll.u32 %s1399_s7, 3 }
  0x17   : > { %s1141_s17 = scalar_lea.vmem %s1386_s0, %s766_s14  ;;  %828 = vmatpush3.bf16.msra.mxu0 %v938_v2 }
  0x18   : > { %v227_v5 = vld [vmem:[%s1141_s17] sm:$0xff]  ;;  %v228_v6 = vld [vmem:[%s1141_s17 + $0x8] sm:$0xff]  ;;  %v229_v10 = vld [vmem:[%s1141_s17 + $0x10] sm:$0xff]  ;;  %829 = vmatprep.subr.bf16.mxu0 %v939_v7  ;;  %889 = vmatpush3.bf16.msra.mxu1 %v942_v9 }
  0x19   : > { %v243_v8 = vpack.c.bf16 %v228_v6, %v227_v5  ;;  %v230_v11 = vld [vmem:[%s1141_s17 + $0x18] sm:$0xff]  ;;  %v231_v12 = vld [vmem:[%s1141_s17 + $0x20] sm:$0xff]  ;;  %v232_v13 = vld [vmem:[%s1141_s17 + $0x28] sm:$0xff]  ;;  %882 = vmatprep.subr.bf16.mxu1 %v943_v15 }
  0x1a   : > { %v244_v14 = vpack.c.bf16 %v230_v11, %v229_v10  ;;  %v245_v16 = vpack.c.bf16 %v232_v13, %v231_v12  ;;  %v233_v17 = vld [vmem:[%s1141_s17 + $0x30] sm:$0xff]  ;;  %v234_v18 = vld [vmem:[%s1141_s17 + $0x38] sm:$0xff]  ;;  %v235_v20 = vld [vmem:[%s1141_s17 + $0x40] sm:$0xff] }
  0x1b   : > { %831 = vmatprep.mubr.msk.bf16.mxu0 %vm283_vm0, %v243_v8  ;;  %830 = vmatpush3.bf16.msra.mxu0 %v939_v7  ;;  %v236_v21 = vld [vmem:[%s1141_s17 + $0x48] sm:$0xff]  ;;  %v246_v22 = vpack.c.bf16 %v234_v18, %v233_v17  ;;  %v237_v25 = vld [vmem:[%s1141_s17 + $0x50] sm:$0xff]  ;;  %v238_v26 = vld [vmem:[%s1141_s17 + $0x58] sm:$0xff] }
  0x1c   : > { %847 = vmatprep.subr.bf16.mxu0 %v940_v3  ;;  %890 = vmatpush3.bf16.msra.mxu1 %v943_v15  ;;  %v247_v23 = vpack.c.bf16 %v236_v21, %v235_v20  ;;  %v239_v27 = vld [vmem:[%s1141_s17 + $0x60] sm:$0xff]  ;;  %v240_v28 = vld [vmem:[%s1141_s17 + $0x68] sm:$0xff]  ;;  %v248_v29 = vpack.c.bf16 %v238_v26, %v237_v25  ;;  %v241_v31 = vld [vmem:[%s1141_s17 + $0x70] sm:$0xff] }
  0x1d   : > { %883 = vmatprep.subr.bf16.mxu1 %v944_v19  ;;  %v249_v30 = vpack.c.bf16 %v240_v28, %v239_v27  ;;  %v242_v32 = vld [vmem:[%s1141_s17 + $0x78] sm:$0xff]  ;;  %s216_s17 = sand.u32 1, %s1034_s19  }
  0x1e   : > { %832 = vmatmul.mubr.msk.bf16.vlgmr.msra.gmra.mrb[0].mxu0 %vm283_vm0, %v244_v14  ;;  %v250_v33 = vpack.c.bf16 %v242_v32, %v241_v31  ;;  %s764_s30 = sshll.u32 %s216_s17, 7  ;;  %s1345_s22 = scalar_lea.sflag [#allocation3], %s216_s17 }
  0x1f   : > { %835 = vmatprep.mubr.msk.bf16.mxu0 %vm283_vm0, %v245_v16  ;;  %848 = vmatpush3.bf16.msra.mxu0 %v940_v3  ;;  %s1278_s8 = scalar_lea.vmem [#allocation2], %s764_s30 }
  0x20   : > { %849 = vmatprep.subr.bf16.mxu0 %v941_v4  ;;  %891 = vmatpush3.bf16.msra.mxu1 %v944_v19  ;;  %s698_s10 = sshll.u32 %s1278_s8, 4  ;;  %s1337_s10 = int_to_ptr.vmem [resolvable:$true] %s698_s10 }
  0x21   : > { %884 = vmatprep.subr.bf16.mxu1 %v945_v24  ;;  %s980_s14 = scalar_lea.vmem %s1337_s10, 2048  ;;  %p987_p0 = scmp.lt.s32.totalorder %s1337_s10, %s985_s16 }
  0x22   : > { %p981_p11 = scmp.ne.s32.totalorder %s1337_s10, %s980_s14  ;;  %p988_p1 = scmp.lt.s32.totalorder %s986_s23, %s980_s14 }
  0x23   : > { %850 = vmatpush3.bf16.msra.mxu0 %v941_v4 }
  0x24   : > { %851 = vmatprep.subr.bf16.mxu0 %v942_v9  ;;  %892 = vmatpush3.bf16.msra.mxu1 %v945_v24  ;;  %p982_p12 = pnand %p981_p11, %p1115_p5  ;;  %p989_p2 = por %p988_p1, %p987_p0 }
  0x25   : > { %885 = vmatprep.subr.bf16.mxu1 %v946_v34 }
  0x26   : > { %836 = vmatmul.mubr.msk.bf16.gmra.mrb[4].mxu0 %vm283_vm0, %v246_v22  ;;  %p983_p13 = pneg %p982_p12 }
  0x27   : > { %839 = vmatprep.mubr.msk.bf16.mxu0 %vm283_vm0, %v247_v23  ;;  %852 = vmatpush3.bf16.msra.mxu0 %v942_v9 }
  0x28   : > { %853 = vmatprep.subr.bf16.mxu0 %v943_v15  ;;  %893 = vmatpush3.bf16.msra.mxu1 %v946_v34  ;;  %p990_p3 = pnand %p989_p2, %p983_p13 }
  0x29   : > { %886 = vmatprep.subr.bf16.mxu1 %v947_v35 }
  0x2b   : > { %854 = vmatpush3.bf16.msra.mxu0 %v943_v15 }
  0x2c   : > { %855 = vmatprep.subr.bf16.mxu0 %v944_v19  ;;  %894 = vmatpush3.bf16.msra.mxu1 %v947_v35 }
  0x2e   : > { %840 = vmatmul.mubr.msk.bf16.gmra.mrb[8].mxu0 %vm283_vm0, %v248_v29  ;;  %v1259_v29 = vld [vmem:[%s1389_s3] ss:$0 sm:$0xff] }
  0x2f   : > { %843 = vmatprep.mubr.msk.bf16.mxu0 %vm283_vm0, %v249_v30  ;;  %856 = vmatpush3.bf16.msra.mxu0 %v944_v19 }
  0x30   : > { %857 = vmatprep.subr.bf16.mxu0 %v945_v24 }
  0x33   : > { %858 = vmatpush3.bf16.msra.mxu0 %v945_v24 }
  0x34   : > { %859 = vmatprep.subr.bf16.mxu0 %v946_v34 }
  0x36   : > { %844 = vmatmul.mubr.msk.bf16.gmra.mrb[12].mxu0 %vm283_vm0, %v250_v33  ;;  %v1267_v33 = vld [vmem:[%s1390_s4] ss:$0 sm:$0xff] }
  0x37   : > { %860 = vmatpush3.bf16.msra.mxu0 %v946_v34 }
  0x38   : > { %861 = vmatprep.subr.bf16.mxu0 %v947_v35 }
  0x3b   : > { %862 = vmatpush3.bf16.msra.mxu0 %v947_v35 }
  0xf1   : > { %v1191_v36 = vpop.f32.mrb[0].mxu0 }
  0xf2   : > { %v1193_v37 = vpop.f32.mrb[1].mxu0  ;;  %v407_v39 = vmul.f32 %v1191_v36, %v1191_v36 }
  0xf3   : > { %v1195_v38 = vpop.f32.mrb[2].mxu0  ;;  %v405_v42 = vmul.f32 %v1193_v37, %v1193_v37 }
  0xf4   : > { %v408_v40 = vmul.f32 %v1195_v38, %v1195_v38  ;;  %v1201_v41 = vpop.f32.mrb[3].mxu0 }
  0xf5   : > { %v406_v43 = vmul.f32 %v1201_v41, %v1201_v41 }
  0xf6   : > { %v422_v44 = vpack.c.bf16 %v408_v40, %v407_v39 }
  0xf7   : > { %v421_v45 = vpack.c.bf16 %v406_v43, %v405_v42 }
  0xf9   : > { %v1207_v46 = vpop.f32.mrb[4].mxu0  ;;  %863 = vmatprep.mubr.bf16.mxu0 %v421_v45 }
  0xfa   : > { %v1209_v47 = vpop.f32.mrb[5].mxu0  ;;  %864 = vmatmul.mubr.bf16.vlgmr.msra.gmra.mrb[16].mxu0 %v422_v44  ;;  %v411_v49 = vmul.f32 %v1207_v46, %v1207_v46 }
  0xfb   : > { %v1211_v48 = vpop.f32.mrb[6].mxu0  ;;  %v409_v52 = vmul.f32 %v1209_v47, %v1209_v47 }
  0xfc   : > { %v412_v50 = vmul.f32 %v1211_v48, %v1211_v48  ;;  %v1217_v51 = vpop.f32.mrb[7].mxu0 }
  0xfd   : > { %v410_v53 = vmul.f32 %v1217_v51, %v1217_v51 }
  0xfe   : > { %v424_v54 = vpack.c.bf16 %v412_v50, %v411_v49 }
  0xff   : > { %v423_v55 = vpack.c.bf16 %v410_v53, %v409_v52 }
 0x101   : > { %v1223_v56 = vpop.f32.mrb[8].mxu0  ;;  %867 = vmatprep.mubr.bf16.mxu1 %v423_v55 }
 0x102   : > { %v1225_v57 = vpop.f32.mrb[9].mxu0  ;;  %868 = vmatmul.mubr.bf16.vlgmr.msra.gmra.mrb[0].mxu1 %v424_v54  ;;  %v415_v59 = vmul.f32 %v1223_v56, %v1223_v56 }
 0x103   : > { %v1227_v58 = vpop.f32.mrb[10].mxu0  ;;  %v413_v62 = vmul.f32 %v1225_v57, %v1225_v57 }
 0x104   : > { %v416_v60 = vmul.f32 %v1227_v58, %v1227_v58  ;;  %v1233_v61 = vpop.f32.mrb[11].mxu0 }
 0x105   : > { %v414_v63 = vmul.f32 %v1233_v61, %v1233_v61 }
 0x106   : > { %v426_v0 = vpack.c.bf16 %v416_v60, %v415_v59 }
 0x107   : > { %v425_v1 = vpack.c.bf16 %v414_v63, %v413_v62 }
 0x109   : > { %v1239_v2 = vpop.f32.mrb[12].mxu0  ;;  %871 = vmatprep.mubr.bf16.mxu1 %v425_v1 }
 0x10a   : > { %v1241_v3 = vpop.f32.mrb[13].mxu0  ;;  %872 = vmatmul.mubr.bf16.gmra.mrb[4].mxu1 %v426_v0  ;;  %v419_v5 = vmul.f32 %v1239_v2, %v1239_v2 }
 0x10b   : > { %v1243_v4 = vpop.f32.mrb[14].mxu0  ;;  %v417_v8 = vmul.f32 %v1241_v3, %v1241_v3 }
 0x10c   : > { %v420_v6 = vmul.f32 %v1243_v4, %v1243_v4  ;;  %v1249_v7 = vpop.f32.mrb[15].mxu0 }
 0x10d   : > { %v418_v9 = vmul.f32 %v1249_v7, %v1249_v7 }
 0x10e   : > { %v428_v10 = vpack.c.bf16 %v420_v6, %v419_v5 }
 0x10f   : > { %v427_v11 = vpack.c.bf16 %v418_v9, %v417_v8 }
 0x111   : > { %875 = vmatprep.mubr.bf16.mxu1 %v427_v11 }
 0x112   : > { %876 = vmatmul.mubr.bf16.gmra.mrb[8].mxu1 %v428_v10 }
 0x1cd   : > { %v865_v12 = vpop.f32.mrb[16].mxu0 }
 0x1ce   : > { %v536_v13 = vadd.f32 1e-05, %v865_v12  ;;  %v527_v14 = vpop.f32.mrb[17].mxu0 }
 0x1cf   : > { %v528_v15 = vadd.f32 1e-05, %v527_v14  ;;  %v866_v16 = vpop.f32.mrb[18].mxu0 }
 0x1d0   : > { %948 = vrsqrt.f32 %v536_v13  ;;  %v539_v17 = vadd.f32 1e-05, %v866_v16  ;;  %v530_v18 = vpop.f32.mrb[19].mxu0 }
 0x1d1   : > { %950 = vrsqrt.f32 %v528_v15  ;;  %v531_v19 = vadd.f32 1e-05, %v530_v18 }
 0x1d2   : > { %952 = vrsqrt.f32 %v539_v17 }
 0x1d3   : > { %954 = vrsqrt.f32 %v531_v19 }
 0x1d5   : > { %v869_v20 = vpop.f32.mrb[0].mxu1 }
 0x1d6   : > { %v552_v21 = vadd.f32 1e-05, %v869_v20  ;;  %v543_v22 = vpop.f32.mrb[1].mxu1 }
 0x1d7   : > { %v544_v23 = vadd.f32 1e-05, %v543_v22  ;;  %v870_v24 = vpop.f32.mrb[2].mxu1 }
 0x1d8   : > { %956 = vrsqrt.f32 %v552_v21  ;;  %v555_v25 = vadd.f32 1e-05, %v870_v24  ;;  %v546_v26 = vpop.f32.mrb[3].mxu1 }
 0x1d9   : > { %958 = vrsqrt.f32 %v544_v23  ;;  %v547_v27 = vadd.f32 1e-05, %v546_v26 }
 0x1da   : > { %v949_v28 = vpop.eup %948  ;;  %960 = vrsqrt.f32 %v555_v25 }
 0x1db   : > { %v951_v30 = vpop.eup %950  ;;  %v608_v31 = vmul.f32 %v949_v28, %v1191_v36  ;;  %962 = vrsqrt.f32 %v547_v27 }
 0x1dc   : > { %v953_v32 = vpop.eup %952  ;;  %v606_v34 = vmul.f32 %v951_v30, %v1193_v37 }
 0x1dd   : > { %v955_v35 = vpop.eup %954  ;;  %v631_v39 = vmul.f32 %v1259_v29, %v608_v31  ;;  %v609_v40 = vmul.f32 %v953_v32, %v1195_v38  ;;  %v873_v42 = vpop.f32.mrb[4].mxu1 }
 0x1de   : > { %v629_v43 = vmul.f32 %v1259_v29, %v606_v34  ;;  %v607_v44 = vmul.f32 %v955_v35, %v1201_v41  ;;  %v568_v36 = vadd.f32 1e-05, %v873_v42  ;;  %v559_v45 = vpop.f32.mrb[5].mxu1 }
 0x1df   : > { %v654_v49 = vadd.f32 %v1267_v33, %v631_v39  ;;  %v632_v50 = vmul.f32 %v1259_v29, %v609_v40  ;;  %v560_v52 = vadd.f32 1e-05, %v559_v45  ;;  %v874_v53 = vpop.f32.mrb[6].mxu1 }
 0x1e0   : > { %v652_v37 = vadd.f32 %v1267_v33, %v629_v43  ;;  %v630_v54 = vmul.f32 %v1259_v29, %v607_v44  ;;  %964 = vrsqrt.f32 %v568_v36  ;;  %v571_v55 = vadd.f32 1e-05, %v874_v53  ;;  %v562_v38 = vpop.f32.mrb[7].mxu1 }
 0x1e1   : > { %670 = vst [vmem:[%s1278_s8 + $0x10] sm:$0xff] %v654_v49  ;;  %v655_v41 = vadd.f32 %v1267_v33, %v632_v50  ;;  %966 = vrsqrt.f32 %v560_v52  ;;  %v563_v59 = vadd.f32 1e-05, %v562_v38 }
 0x1e2   : > { %v957_v60 = vpop.eup %956  ;;  %668 = vst [vmem:[%s1278_s8] sm:$0xff] %v652_v37  ;;  %v653_v62 = vadd.f32 %v1267_v33, %v630_v54  ;;  %968 = vrsqrt.f32 %v571_v55 }
 0x1e3   : > { %v959_v63 = vpop.eup %958  ;;  %671 = vst [vmem:[%s1278_s8 + $0x18] sm:$0xff] %v655_v41  ;;  %v612_v0 = vmul.f32 %v957_v60, %v1207_v46  ;;  %970 = vrsqrt.f32 %v563_v59 }
 0x1e4   : > { %v961_v1 = vpop.eup %960  ;;  %669 = vst [vmem:[%s1278_s8 + $0x8] sm:$0xff] %v653_v62  ;;  %v610_v5 = vmul.f32 %v959_v63, %v1209_v47 }
 0x1e5   : > { %v963_v6 = vpop.eup %962  ;;  %v635_v8 = vmul.f32 %v1259_v29, %v612_v0  ;;  %v613_v9 = vmul.f32 %v961_v1, %v1211_v48  ;;  %v877_v10 = vpop.f32.mrb[8].mxu1 }
 0x1e6   : > { %v633_v11 = vmul.f32 %v1259_v29, %v610_v5  ;;  %v611_v12 = vmul.f32 %v963_v6, %v1217_v51  ;;  %v584_v13 = vadd.f32 1e-05, %v877_v10  ;;  %v575_v14 = vpop.f32.mrb[9].mxu1 }
 0x1e7   : > { %v658_v46 = vadd.f32 %v1267_v33, %v635_v8  ;;  %v636_v15 = vmul.f32 %v1259_v29, %v613_v9  ;;  %v576_v16 = vadd.f32 1e-05, %v575_v14  ;;  %v878_v47 = vpop.f32.mrb[10].mxu1 }
 0x1e8   : > { %v656_v17 = vadd.f32 %v1267_v33, %v633_v11  ;;  %v634_v18 = vmul.f32 %v1259_v29, %v611_v12  ;;  %972 = vrsqrt.f32 %v584_v13  ;;  %v587_v48 = vadd.f32 1e-05, %v878_v47  ;;  %v578_v19 = vpop.f32.mrb[11].mxu1 }
 0x1e9   : > { %674 = vst [vmem:[%s1278_s8 + $0x30] sm:$0xff] %v658_v46  ;;  %v659_v51 = vadd.f32 %v1267_v33, %v636_v15  ;;  %974 = vrsqrt.f32 %v576_v16  ;;  %v579_v20 = vadd.f32 1e-05, %v578_v19 }
 0x1ea   : > { %v965_v21 = vpop.eup %964  ;;  %672 = vst [vmem:[%s1278_s8 + $0x20] sm:$0xff] %v656_v17  ;;  %v657_v22 = vadd.f32 %v1267_v33, %v634_v18  ;;  %976 = vrsqrt.f32 %v587_v48 }
 0x1eb   : > { %v967_v23 = vpop.eup %966  ;;  %675 = vst [vmem:[%s1278_s8 + $0x38] sm:$0xff] %v659_v51  ;;  %v616_v24 = vmul.f32 %v965_v21, %v1223_v56  ;;  %978 = vrsqrt.f32 %v579_v20 }
 0x1ec   : > { %v969_v25 = vpop.eup %968  ;;  %673 = vst [vmem:[%s1278_s8 + $0x28] sm:$0xff] %v657_v22  ;;  %v614_v26 = vmul.f32 %v967_v23, %v1225_v57 }
 0x1ed   : > { %v971_v27 = vpop.eup %970  ;;  %v639_v28 = vmul.f32 %v1259_v29, %v616_v24  ;;  %v617_v30 = vmul.f32 %v969_v25, %v1227_v58 }
 0x1ee   : > { %v637_v31 = vmul.f32 %v1259_v29, %v614_v26  ;;  %v615_v32 = vmul.f32 %v971_v27, %v1233_v61 }
 0x1ef   : > { %v662_v34 = vadd.f32 %v1267_v33, %v639_v28  ;;  %v640_v56 = vmul.f32 %v1259_v29, %v617_v30 }
 0x1f0   : > { %v660_v35 = vadd.f32 %v1267_v33, %v637_v31  ;;  %v638_v39 = vmul.f32 %v1259_v29, %v615_v32 }
 0x1f1   : > { %678 = vst [vmem:[%s1278_s8 + $0x50] sm:$0xff] %v662_v34  ;;  %v663_v57 = vadd.f32 %v1267_v33, %v640_v56 }
 0x1f2   : > { %v973_v40 = vpop.eup %972  ;;  %676 = vst [vmem:[%s1278_s8 + $0x40] sm:$0xff] %v660_v35  ;;  %v661_v58 = vadd.f32 %v1267_v33, %v638_v39 }
 0x1f3   : > { %v975_v42 = vpop.eup %974  ;;  %679 = vst [vmem:[%s1278_s8 + $0x58] sm:$0xff] %v663_v57  ;;  %v620_v61 = vmul.f32 %v973_v40, %v1239_v2 }
 0x1f4   : > { %v977_v43 = vpop.eup %976  ;;  %677 = vst [vmem:[%s1278_s8 + $0x48] sm:$0xff] %v661_v58  ;;  %v618_v44 = vmul.f32 %v975_v42, %v1241_v3 }
 0x1f5   : > { %v979_v36 = vpop.eup %978  ;;  %v643_v45 = vmul.f32 %v1259_v29, %v620_v61  ;;  %v621_v49 = vmul.f32 %v977_v43, %v1243_v4 }
 0x1f6   : > { %v641_v50 = vmul.f32 %v1259_v29, %v618_v44  ;;  %v619_v52 = vmul.f32 %v979_v36, %v1249_v7 }
 0x1f7   : > { %v666_v2 = vadd.f32 %v1267_v33, %v643_v45  ;;  %v644_v3 = vmul.f32 %v1259_v29, %v621_v49 }
 0x1f8   : > { %v664_v53 = vadd.f32 %v1267_v33, %v641_v50  ;;  %v642_v37 = vmul.f32 %v1259_v29, %v619_v52 }
 0x1f9   : > { %682 = vst [vmem:[%s1278_s8 + $0x70] sm:$0xff] %v666_v2  ;;  %v667_v4 = vadd.f32 %v1267_v33, %v644_v3 }
 0x1fa   : > { %680 = vst [vmem:[%s1278_s8 + $0x60] sm:$0xff] %v664_v53  ;;  %v665_v7 = vadd.f32 %v1267_v33, %v642_v37 }
 0x1fb   : > { %683 = vst [vmem:[%s1278_s8 + $0x78] sm:$0xff] %v667_v4 }
 0x1fc   : > { %681 = vst [vmem:[%s1278_s8 + $0x68] sm:$0xff] %v665_v7 }
 0x1fd   : > { %993 = shalt.err (!%p990_p3)
}
 0x1fe   : > { %s994_s17 = scalar_lea.hbm %s1335_s13, 2048  ;;  %s998_s30 = scalar_lea.hbm %s1391_s5, 8192 }
 0x1ff   : > { %p995_p4 = scmp.ne.s32.totalorder %s1335_s13, %s994_s17  ;;  %p999_p9 = scmp.lt.u32.totalorder %s1335_s13, %s1391_s5 }
 0x200   : > { %p1000_p10 = scmp.lt.u32.totalorder %s998_s30, %s994_s17  ;;  %p1002_p12 = scmp.lt.u32.totalorder %s994_s17, %s1335_s13 }
 0x201   : > { %p996_p7 = pnand %p995_p4, %p1115_p5 }
 0x202   : > { %p1001_p11 = por %p1000_p10, %p999_p9 }
 0x203   : > { %p997_p8 = pneg %p996_p7 }
 0x204   : > { %p1003_p13 = por %p1002_p12, %p1001_p11 }
 0x206   : > { %p1004_p0 = pnand %p1003_p13, %p997_p8 }
 0x208   : > { %1007 = shalt.err (!%p1004_p0)
}
 0x209   : > { %s1045_s8 = smov 128   ;;  %s1046_s9 = smov 8  }
 0x20a   : > { %895 = dma.vmem_to_hbm [thread:$0]  (%p1115_p5), %s1337_s10, 2048, %s1335_s13, %s1345_s22, %s1045_s8, %s1045_s8, %s1046_s9  }
 0x20b PF: > { %p901_p1 = scmp.ge.s32.totalorder %s1042_s21, 2  ;;  %s713_s11 = sand.u32 1, %s1030_s18  }
 0x20c   : > { %s714_s12 = scalar_lea.sflag [#allocation3], %s713_s11 }
 0x20d   : > { %p898_p2 = pnand %p901_p1, %p1119_p6 }
 0x20f   : > { %1025 = dma.done.wait (!%p898_p2), %s714_s12, 2048  }
 0x210   : > { %1027 = vsyncadd (!%p898_p2), %s714_s12, 4294965248  ;;  %p15_p3 = scmp.ge.s32.totalorder %s1102_s24, 6   ;;  %s1394_s18 = smov %s1034_s19 }
 0x211   : > { %s1395_s19 = smov %s1038_s20  ;;  %s1396_s20 = smov %s1113_s27 }
 0x212   : > { %s1397_s21 = smov %s1102_s24  ;;  %17 = sbr.rel (!%p15_p3) target bundleno = 3 (0x3), region = 75 }
 0x219   :  { %719 = vsyncpa [#allocation3], 1 }
 0x21a   :  { %721 = vsyncpa [#allocation3 + $0x1], 1 }

</bundles_post_ra>
